<compile_context>
chip_gen: v7x
topology: tpu7x:2x2x1
jax: 0.10.0
libtpu: 0.0.40
codegen_flags: <defaults>
</compile_context>

<pallas_src>
import numpy as np
import jax
import jax.numpy as jnp
from jax import lax
from jax.experimental import pallas as pl
from jax.experimental.pallas import tpu as pltpu


def _round_up(a, b):
    return -(-a // b) * b


# --------------------------------------------------------------------------
# Pallas kernel: streaming reductions over the large `dim` axis.
# --------------------------------------------------------------------------
def _ppca_reduce_kernel(x_ref, wt_ref, dot_ref, ssq_ref):
    k = pl.program_id(2)                      # reduction axis (last in grid)

    @pl.when(k == 0)
    def _():
        dot_ref[...] = jnp.zeros_like(dot_ref)
        ssq_ref[...] = jnp.zeros_like(ssq_ref)

    xf = x_ref[...].astype(jnp.float32)       # (tb, tk)
    wt = wt_ref[...].astype(jnp.float32)      # (L1p, tk), lane-dense

    # dot += x @ Wt_aug^T : contract the lane axes directly, no transpose.
    dot_ref[...] += lax.dot_general(
        xf, wt, (((1,), (1,)), ((), ())),
        preferred_element_type=jnp.float32)
    ssq_ref[...] += jnp.sum(xf * xf, axis=1, keepdims=True)


def _vmem_budgets():
    """(input double-buffer budget, vmem_limit_bytes), generation-aware."""
    cap = None
    try:
        info = pltpu.get_tpu_info()
        cap = int(getattr(info, "vmem_capacity_bytes", 0)) or None
    except Exception:
        cap = None
    if cap is not None and cap > 80 * 1024 * 1024:
        # v5e / v6e class: 128 MiB physical VMEM.
        return 40 * 1024 * 1024, 96 * 1024 * 1024
    # v7x class (64 MiB) or unknown: stay conservative.
    return 12 * 1024 * 1024, 32 * 1024 * 1024


def _choose_tiles(B, dim, L1p, budget):
    """Pick (tb, tk): batch tile and lane-aligned reduction tile."""
    if B >= 16:
        # Cap the batch tile and guarantee >= 2 batch tiles (v7x megacore).
        tb = min(256, _round_up(-(-B // 2), 8))
    else:
        tb = B                                # tiny batch: handled via S-split

    dim128 = _round_up(dim, 128)
    tk = 128
    for cand in (8192, 4096, 2048, 1024, 512, 256, 128):
        if cand > dim128:
            continue
        # double-buffered f32 input blocks + in-kernel f32 temporaries.
        need = 2 * 4 * (tb * cand + L1p * cand) + 2 * 4 * tb * cand
        if need > budget:
            continue
        if _round_up(dim, cand) - dim > max(dim // 8, 127):  # cap zero-pad
            continue
        tk = cand
        break
    return tb, tk


def ppca_streaming_stats(x_flat, wt_aug):
    """x_flat: (B, dim), wt_aug: (L1, dim) -> (dot (B, L1), ssq (B, 1)) f32.

    dot[b, j] = sum_d x[b, d] * wt_aug[j, d];  ssq[b] = sum_d x[b, d]^2.
    """
    B, dim = x_flat.shape
    L1 = wt_aug.shape[0]
    L1p = _round_up(max(L1, 8), 8)            # keep the small operand 8-aligned
    if L1p != L1:
        wt_aug = jnp.pad(wt_aug, ((0, L1p - L1), (0, 0)))

    budget, vmem_limit = _vmem_budgets()
    tb, tk = _choose_tiles(B, dim, L1p, budget)

    nb = -(-B // tb)
    nk_total = -(-dim // tk)
    # v7x megacore: if there is only one batch tile, split the reduction
    # across a leading size-2 "parallel" axis instead (partial sums in JAX).
    S = 2 if (nb < 2 and nk_total >= 2) else 1

    dim_p = _round_up(dim, tk * S)
    B_p = nb * tb
    nk = dim_p // (tk * S)

    # Zero padding is neutral for both reductions.
    if dim_p != dim:
        pad = dim_p - dim
        x_flat = jnp.pad(x_flat, ((0, 0), (0, pad)))
        wt_aug = jnp.pad(wt_aug, ((0, 0), (0, pad)))
    if B_p != B:
        x_flat = jnp.pad(x_flat, ((0, B_p - B), (0, 0)))

    grid = (S, nb, nk)
    out_shapes = (
        jax.ShapeDtypeStruct((S, B_p, L1p), jnp.float32),
        jax.ShapeDtypeStruct((S, B_p, 1), jnp.float32),
    )

    dot_p, ssq_p = pl.pallas_call(
        _ppca_reduce_kernel,
        out_shape=out_shapes,
        grid_spec=pltpu.PrefetchScalarGridSpec(
            num_scalar_prefetch=0,
            grid=grid,
            in_specs=[
                pl.BlockSpec((tb, tk), lambda s, i, k: (i, s * nk + k)),   # x
                pl.BlockSpec((L1p, tk), lambda s, i, k: (0, s * nk + k)),  # Wt_aug
            ],
            out_specs=[
                pl.BlockSpec((None, tb, L1p), lambda s, i, k: (s, i, 0)),
                pl.BlockSpec((None, tb, 1), lambda s, i, k: (s, i, 0)),
            ],
        ),
        compiler_params=pltpu.CompilerParams(
            dimension_semantics=("parallel", "parallel", "arbitrary"),
            vmem_limit_bytes=vmem_limit),
    )(x_flat, wt_aug)

    dot = jnp.sum(dot_p, axis=0)[:B, :L1]     # combine S partials, drop pads
    ssq = jnp.sum(ssq_p, axis=0)[:B]
    return dot, ssq


# --------------------------------------------------------------------------
# Module mirror (torch PPCAPrior after its lazy _initialize()).
# --------------------------------------------------------------------------
class PPCAPriorPallas:

    def __init__(self, x_shape, lat_dim, key):
        self.shape = list(x_shape[1:])
        self.dim = int(np.prod(self.shape))
        self.lat_dim = int(lat_dim)
        # Deterministic parameter init (same construction as _initialize).
        self.mean = jnp.zeros(self.shape, jnp.float32)
        k1, k2 = jax.random.split(key)
        a = jax.random.normal(k1, (self.dim,), jnp.float32)
        b = jax.random.normal(k2, (self.lat_dim,), jnp.float32)
        self.W = 0.01 * (a[:, None] @ b[None, :])       # (dim, L)
        self.log_phi = jnp.float32(0.0)
        self._refresh_cache()

    def _refresh_cache(self):
        """Recompute parameter-only derived quantities.

        Call after any update to self.mean / self.W (in a functional training
        setting these should be recomputed from the passed-in params)."""
        mean_flat = self.mean.reshape(1, self.dim).astype(jnp.float32)
        Wt = jnp.asarray(self.W.T, jnp.float32)                 # (L, dim)
        self.gram = Wt @ Wt.T                                    # (L, L)
        self.Wt_aug = jnp.concatenate([Wt, mean_flat], axis=0)   # (L+1, dim)
        self.meanW = (mean_flat @ self.W).reshape(1, self.lat_dim)
        self.mean_sq = jnp.sum(mean_flat * mean_flat)

    def _phi(self):
        # TODO(synk): torch _diff_clamp is presumably a straight-through clamp;
        # jnp.clip matches the forward value but has zero gradient outside [-5, 3].
        return jnp.clip(self.log_phi, -5.0, 3.0)

    def _logp_from_stats(self, Wm, ss, gram, z):
        L = self.lat_dim
        phi = self._phi()
        M = gram + jnp.eye(L, dtype=jnp.float32) * jnp.exp(phi)   # (L, L)
        sol = jnp.linalg.solve(M, Wm.T).T                          # (B, L)
        logdetM = jnp.linalg.slogdet(M)[1]

        # _evidence
        mahala_e = (ss - jnp.sum(Wm * sol, axis=1)) * jnp.exp(-phi)
        det_e = (self.dim - L) * phi + logdetM
        ev = -0.5 * (mahala_e + det_e + self.dim * np.log(2.0 * np.pi))
        if z is None:
            return ev

        # _post
        m2 = z - sol                                               # (B, L)
        mahala_p = jnp.sum(m2 * (m2 @ M), axis=-1) * jnp.exp(-phi)
        det_p = L * phi - logdetM
        post = -0.5 * (mahala_p + det_p + L * np.log(2.0 * np.pi))
        return ev + post

    def __call__(self, x, z=None):
        B = x.shape[0]
        L = self.lat_dim
        x_flat = x.reshape(B, self.dim)
        dot, ssq = ppca_streaming_stats(x_flat, self.Wt_aug)
        Wm = dot[:, :L] - self.meanW                       # (x - mean) @ W
        ss = ssq[:, 0] - 2.0 * dot[:, L] + self.mean_sq    # sum((x-mean)^2, 1)
        return self._logp_from_stats(Wm, ss, self.gram, z)

    # Pure-JAX reference of the torch forward, for correctness checking.
    def reference(self, x, z=None):
        B = x.shape[0]
        m = x.reshape(B, self.dim) - self.mean.reshape(1, self.dim)
        Wm = m @ self.W
        ss = jnp.sum(m * m, axis=1)
        gram = self.W.T @ self.W
        return self._logp_from_stats(Wm, ss, gram, z)


if __name__ == "__main__":
    key = jax.random.PRNGKey(0)
    kx, kz, kp, km, kx2, kz2 = jax.random.split(key, 6)

    B, C, H, Wd = 2, 4, 16, 16         # x: (2, 4, 16, 16)  -> dim = 1024
    lat_dim = 8                        # z: (2, 8)

    x = jax.random.normal(kx, (B, C, H, Wd), jnp.float32)
    z = jax.random.normal(kz, (B, lat_dim), jnp.float32)

    prior = PPCAPriorPallas(x.shape, lat_dim, kp)

    out = jax.block_until_ready(prior(x, z))
    ref = jax.block_until_ready(prior.reference(x, z))
    assert out.shape == (B,)
    np.testing.assert_allclose(np.asarray(out), np.asarray(ref),
                               rtol=1e-4, atol=1e-2)

    # z=None path (evidence only).
    out_ev = jax.block_until_ready(prior(x))
    ref_ev = jax.block_until_ready(prior.reference(x))
    np.testing.assert_allclose(np.asarray(out_ev), np.asarray(ref_ev),
                               rtol=1e-4, atol=1e-2)

    # Non-128-multiple dim, tiny batch -> exercises the zero-pad + S=2 split.
    x_odd = jax.random.normal(kx, (B, 3, 10, 10), jnp.float32)   # dim = 300
    prior_odd = PPCAPriorPallas(x_odd.shape, lat_dim, kp)
    out_odd = jax.block_until_ready(prior_odd(x_odd, z))
    ref_odd = jax.block_until_ready(prior_odd.reference(x_odd, z))
    np.testing.assert_allclose(np.asarray(out_odd), np.asarray(ref_odd),
                               rtol=1e-4, atol=1e-2)

    # Larger batch with nonzero mean -> exercises batch tiling/padding and
    # the folded-mean correction path.
    Bb = 20
    x_big = jax.random.normal(kx2, (Bb, 3, 8, 16), jnp.float32)  # dim = 384
    z_big = jax.random.normal(kz2, (Bb, lat_dim), jnp.float32)
    prior_big = PPCAPriorPallas(x_big.shape, lat_dim, kp)
    prior_big.mean = 0.1 * jax.random.normal(km, (3, 8, 16), jnp.float32)
    prior_big._refresh_cache()
    out_big = jax.block_until_ready(prior_big(x_big, z_big))
    ref_big = jax.block_until_ready(prior_big.reference(x_big, z_big))
    assert out_big.shape == (Bb,)
    np.testing.assert_allclose(np.asarray(out_big), np.asarray(ref_big),
                               rtol=1e-4, atol=5e-2)

    print("KERNEL_OK")
</pallas_src>

<mosaic_0001>
module attributes {stable_mosaic.version = 11 : i64} {
  func.func @_ppca_reduce_kernel(%arg0: i32, %arg1: i32, %arg2: i32, %arg3: memref<2x1024xf32, #tpu.memory_space<vmem>>, %arg4: memref<16x1024xf32, #tpu.memory_space<vmem>>, %arg5: memref<1x2x16xf32, #tpu.memory_space<vmem>>, %arg6: memref<1x2x1xf32, #tpu.memory_space<vmem>>) attributes {dimension_semantics = [#tpu.dimension_semantics<parallel>, #tpu.dimension_semantics<parallel>, #tpu.dimension_semantics<arbitrary>], iteration_bounds = array<i64: 1, 1, 1>, scalar_prefetch = 0 : i64, scratch_operands = 0 : i64, tpu.core_type = #tpu.core_type<tc>, window_params = [{transform_indices = @transform_0, window_bounds = array<i64: 2, 1024>}, {transform_indices = @transform_1, window_bounds = array<i64: 16, 1024>}, {transform_indices = @transform_2, window_bounds = array<i64: 1, 2, 16>}, {transform_indices = @transform_3, window_bounds = array<i64: 1, 2, 1>}]} {
    %c0_i32 = arith.constant 0 : i32
    %0 = arith.cmpi eq, %arg2, %c0_i32 : i32
    %1 = arith.extui %0 : i1 to i32
    %c0_i32_0 = arith.constant 0 : i32
    %2 = arith.cmpi ne, %1, %c0_i32_0 : i32
    scf.if %2 {
      %cst_17 = arith.constant 0.000000e+00 : f32
      %21 = vector.broadcast %cst_17 : f32 to vector<2x16xf32>
      %c0_18 = arith.constant 0 : index
      %c0_19 = arith.constant 0 : index
      %c0_20 = arith.constant 0 : index
      %22 = vector.load %arg5[%c0_18, %c0_19, %c0_20] : memref<1x2x16xf32, #tpu.memory_space<vmem>>, vector<1x2x16xf32>
      %23 = vector.shape_cast %22 : vector<1x2x16xf32> to vector<2x16xf32>
      %24 = vector.shape_cast %21 : vector<2x16xf32> to vector<1x2x16xf32>
      tpu.vector_store %arg5[%c0_18, %c0_19, %c0_20], %24 {strides = array<i32>} : memref<1x2x16xf32, #tpu.memory_space<vmem>>, vector<1x2x16xf32>,
      %cst_21 = arith.constant 0.000000e+00 : f32
      %25 = vector.broadcast %cst_21 : f32 to vector<2x1xf32>
      %c0_22 = arith.constant 0 : index
      %c0_23 = arith.constant 0 : index
      %c0_24 = arith.constant 0 : index
      %26 = vector.load %arg6[%c0_22, %c0_23, %c0_24] : memref<1x2x1xf32, #tpu.memory_space<vmem>>, vector<1x2x1xf32>
      %27 = vector.shape_cast %26 : vector<1x2x1xf32> to vector<2x1xf32>
      %28 = vector.shape_cast %25 : vector<2x1xf32> to vector<1x2x1xf32>
      tpu.vector_store %arg6[%c0_22, %c0_23, %c0_24], %28 {strides = array<i32>} : memref<1x2x1xf32, #tpu.memory_space<vmem>>, vector<1x2x1xf32>,
    } else {
    }
    %c0 = arith.constant 0 : index
    %c0_1 = arith.constant 0 : index
    %3 = vector.load %arg3[%c0, %c0_1] : memref<2x1024xf32, #tpu.memory_space<vmem>>, vector<2x1024xf32>
    %c0_2 = arith.constant 0 : index
    %c0_3 = arith.constant 0 : index
    %4 = vector.load %arg4[%c0_2, %c0_3] : memref<16x1024xf32, #tpu.memory_space<vmem>>, vector<16x1024xf32>
    %c0_4 = arith.constant 0 : index
    %c0_5 = arith.constant 0 : index
    %c0_6 = arith.constant 0 : index
    %5 = vector.load %arg5[%c0_4, %c0_5, %c0_6] : memref<1x2x16xf32, #tpu.memory_space<vmem>>, vector<1x2x16xf32>
    %6 = vector.shape_cast %5 : vector<1x2x16xf32> to vector<2x16xf32>
    %cst = arith.constant dense<0.000000e+00> : vector<2x16xf32>
    %7 = tpu.matmul %3, %4, %cst {dimension_numbers = #tpu.dot_dimension_numbers<[1], [1], [0], [0], [0, 0, 1, 0], [], []>} : vector<2x1024xf32>, vector<16x1024xf32>, vector<2x16xf32> -> vector<2x16xf32>
    %8 = arith.addf %6, %7 : vector<2x16xf32>
    %c0_7 = arith.constant 0 : index
    %c0_8 = arith.constant 0 : index
    %c0_9 = arith.constant 0 : index
    %9 = vector.load %arg5[%c0_7, %c0_8, %c0_9] : memref<1x2x16xf32, #tpu.memory_space<vmem>>, vector<1x2x16xf32>
    %10 = vector.shape_cast %9 : vector<1x2x16xf32> to vector<2x16xf32>
    %11 = vector.shape_cast %8 : vector<2x16xf32> to vector<1x2x16xf32>
    tpu.vector_store %arg5[%c0_7, %c0_8, %c0_9], %11 {strides = array<i32>} : memref<1x2x16xf32, #tpu.memory_space<vmem>>, vector<1x2x16xf32>,
    %c0_10 = arith.constant 0 : index
    %c0_11 = arith.constant 0 : index
    %c0_12 = arith.constant 0 : index
    %12 = vector.load %arg6[%c0_10, %c0_11, %c0_12] : memref<1x2x1xf32, #tpu.memory_space<vmem>>, vector<1x2x1xf32>
    %13 = vector.shape_cast %12 : vector<1x2x1xf32> to vector<2x1xf32>
    %14 = arith.mulf %3, %3 : vector<2x1024xf32>
    %cst_13 = arith.constant dense<0.000000e+00> : vector<2xf32>
    %15 = vector.multi_reduction <add>, %14, %cst_13 [1] : vector<2x1024xf32> to vector<2xf32>
    %16 = vector.shape_cast %15 : vector<2xf32> to vector<2x1xf32>
    %17 = arith.addf %13, %16 : vector<2x1xf32>
    %c0_14 = arith.constant 0 : index
    %c0_15 = arith.constant 0 : index
    %c0_16 = arith.constant 0 : index
    %18 = vector.load %arg6[%c0_14, %c0_15, %c0_16] : memref<1x2x1xf32, #tpu.memory_space<vmem>>, vector<1x2x1xf32>
    %19 = vector.shape_cast %18 : vector<1x2x1xf32> to vector<2x1xf32>
    %20 = vector.shape_cast %17 : vector<2x1xf32> to vector<1x2x1xf32>
    tpu.vector_store %arg6[%c0_14, %c0_15, %c0_16], %20 {strides = array<i32>} : memref<1x2x1xf32, #tpu.memory_space<vmem>>, vector<1x2x1xf32>,
    return
  }
  func.func @transform_0(%arg0: i32, %arg1: i32, %arg2: i32) -> (i32, i32) {
    %c1_i32 = arith.constant 1 : i32
    %0 = arith.muli %arg0, %c1_i32 : i32
    %1 = arith.addi %0, %arg2 : i32
    %c0_i32 = arith.constant 0 : i32
    return %arg1, %1 : i32, i32
  }
  func.func @transform_1(%arg0: i32, %arg1: i32, %arg2: i32) -> (i32, i32) {
    %c1_i32 = arith.constant 1 : i32
    %0 = arith.muli %arg0, %c1_i32 : i32
    %1 = arith.addi %0, %arg2 : i32
    %c0_i32 = arith.constant 0 : i32
    %c0_i32_0 = arith.constant 0 : i32
    return %c0_i32, %1 : i32, i32
  }
  func.func @transform_2(%arg0: i32, %arg1: i32, %arg2: i32) -> (i32, i32, i32) {
    %c0_i32 = arith.constant 0 : i32
    %c0_i32_0 = arith.constant 0 : i32
    return %arg0, %arg1, %c0_i32 : i32, i32, i32
  }
  func.func @transform_3(%arg0: i32, %arg1: i32, %arg2: i32) -> (i32, i32, i32) {
    %c0_i32 = arith.constant 0 : i32
    %c0_i32_0 = arith.constant 0 : i32
    return %arg0, %arg1, %c0_i32 : i32, i32, i32
  }
}

</mosaic_0001>

<bundles_post_ra>
// kernel: tpu_custom_call.1
= control target key start
LH: loop header
LB: loop body
LE: loop exit
PB: predicated region body
PF: predicated region fallthrough
CT: control target
= control target key end

     0   :  { %9 = vsyncpa [#allocation3], 0  ;;  %s680_s0 = inlined_call_operand.hbm [shape: f32[2,1024], index: 0, kind: input, shape index: {}]   ;;  %s681_s1 = inlined_call_operand.hbm [shape: f32[16,1024], index: 1, kind: input, shape index: {}]   ;;  %s682_s2 = inlined_call_operand.hbm [shape: f32[1,2,16], index: 2, kind: output, shape index: {0}]   ;;  %s683_s3 = inlined_call_operand.vmem [shape: f32[1,2,1], index: 3, kind: output, shape index: {1}]  }
   0x1   :  { %10 = vsyncpa [#allocation6], 0 }
   0x2   :  { %11 = vsyncpa [#allocation4], 0  ;;  %s591_s12 = smov [#allocation2]   ;;  %s592_s14 = smov [#allocation5]  }
   0x3   :  { %s22_s13 = sshll.u32 %s591_s12, 4  ;;  %s35_s15 = sshll.u32 %s592_s14, 4  ;;  %s23_s13 = int_to_ptr.vmem [resolvable:$true] %s22_s13  ;;  %s618_s15 = int_to_ptr.vmem [resolvable:$true] %s35_s15 }
   0x4   :  { %s519_s18 = scalar_lea.hbm %s680_s0, 256 }
   0x5   :  { %p520_p0 = scmp.ne.s32.totalorder %s680_s0, %s519_s18  ;;  %p523_p1 = scmp.lt.u32.totalorder %s519_s18, %s680_s0 }
   0x7   :  { %p525_p2 = pnand %p523_p1, %p520_p0 }
   0x9   :  { %528 = shalt.err (!%p525_p2)
}
   0xa   :  { %s529_s23 = scalar_lea.vmem %s23_s13, 256  ;;  %p534_p4 = scmp.lt.s32.totalorder %s23_s13, %s23_s13 }
   0xb   :  { %p530_p3 = scmp.ne.s32.totalorder %s23_s13, %s529_s23  ;;  %p535_p5 = scmp.lt.s32.totalorder %s529_s23, %s529_s23 }
   0xd   :  { %p536_p6 = por %p535_p5, %p534_p4 }
   0xf   :  { %p537_p7 = pnand %p536_p6, %p530_p3 }
  0x11   :  { %540 = shalt.err (!%p537_p7)
}
  0x12   :  { %25 = dma.hbm_to_vmem [thread:$0]  %s680_s0, 256, %s23_s13, [#allocation3]  }
  0x13   :  { %s541_s28 = scalar_lea.hbm %s681_s1, 2048 }
  0x14   :  { %p542_p8 = scmp.ne.s32.totalorder %s681_s1, %s541_s28  ;;  %p545_p9 = scmp.lt.u32.totalorder %s541_s28, %s681_s1 }
  0x16   :  { %p547_p10 = pnand %p545_p9, %p542_p8 }
  0x18   :  { %550 = shalt.err (!%p547_p10)
}
  0x19   :  { %s551_s6 = scalar_lea.vmem %s618_s15, 2048  ;;  %p556_p12 = scmp.lt.s32.totalorder %s618_s15, %s618_s15 }
  0x1a   :  { %p552_p11 = scmp.ne.s32.totalorder %s618_s15, %s551_s6  ;;  %p557_p13 = scmp.lt.s32.totalorder %s551_s6, %s551_s6 }
  0x1c   :  { %p558_p0 = por %p557_p13, %p556_p12 }
  0x1e   :  { %p559_p1 = pnand %p558_p0, %p552_p11 }
  0x20   :  { %562 = shalt.err (!%p559_p1)
}
  0x21   :  { %s593_s0 = smov 1024   ;;  %s594_s7 = smov 64  }
  0x22   :  { %41 = dma.hbm_to_vmem [thread:$0]  %s681_s1, 2048, %s618_s15, [#allocation6], %s593_s0, %s593_s0, %s594_s7  }
  0x23   :  { %585 = dma.done.wait [#allocation3], 256  }
  0x24   :  { %586 = vsyncadd [#allocation3], 4294967040 }
  0x25   :  { %587 = dma.done.wait [#allocation6], 2048  }
  0x26   :  { %588 = vsyncadd [#allocation6], 4294965248  ;;  %v85_v0 = vlaneseq  ;;  %v595_v1 = vmov 1983009808   ;;  %v63_v6 = vld [vmem:[#allocation5 + $0x8] sm:$0xff]  ;;  %v62_v8 = vld [vmem:[#allocation5] sm:$0xff] }
  0x27   :  { %v83_v2 = vunpack.c.l.s4 %v595_v1  ;;  %v71_v7 = vld [vmem:[#allocation5 + $0x48] sm:$0xff]  ;;  %v70_v10 = vld [vmem:[#allocation5 + $0x40] sm:$0xff]  ;;  %v65_v11 = vld [vmem:[#allocation5 + $0x18] sm:$0xff]  ;;  %vm453_vm0 = vcmask 1041408   ;;  %vm56_vm1 = vcmask 123904   ;;  %vm58_vm2 = vcmask 1024  }
  0x28   :  { %v86_v3 = vshrl.u32 %v85_v0, 7  ;;  %v494_v9 = vpack.c.bf16 %v71_v7, %v63_v6  ;;  %v73_v12 = vld [vmem:[#allocation5 + $0x58] sm:$0xff]  ;;  %v496_v13 = vpack.c.bf16 %v70_v10, %v62_v8  ;;  %v64_v15 = vld [vmem:[#allocation5 + $0x10] sm:$0xff]  ;;  %v67_v22 = vld [vmem:[#allocation5 + $0x28] sm:$0xff]  ;;  %s597_s15 = smov [#allocation7]  }
  0x29   :  { %v84_v4 = vunpack.c.0.s8 %v83_v2  ;;  %v498_v14 = vpack.c.bf16 %v73_v12, %v65_v11  ;;  %v72_v16 = vld [vmem:[#allocation5 + $0x50] sm:$0xff]  ;;  %v75_v23 = vld [vmem:[#allocation5 + $0x68] sm:$0xff]  ;;  %v66_v24 = vld [vmem:[#allocation5 + $0x20] sm:$0xff]  ;;  %s480_s16 = sshll.u32 %s597_s15, 4  ;;  %s481_s16 = int_to_ptr.vmem [resolvable:$true] %s480_s16 }
  0x2a   :  { %v60_v17 = vld [vmem:[#allocation2] sm:$0xff]  ;;  %495 = vmatprep.subr.bf16.mxu0 %v494_v9  ;;  %v500_v18 = vpack.c.bf16 %v72_v16, %v64_v15  ;;  %v502_v25 = vpack.c.bf16 %v75_v23, %v67_v22  ;;  %v74_v26 = vld [vmem:[#allocation5 + $0x60] sm:$0xff]  ;;  %v69_v27 = vld [vmem:[#allocation5 + $0x38] sm:$0xff]  ;;  %s563_s17 = scalar_lea.vmem %s481_s16, 32  ;;  %p568_p3 = scmp.lt.s32.totalorder %s481_s16, %s481_s16 }
  0x2b   :  { %v87_v5 = vsub.s32 %v84_v4, %v86_v3  ;;  %v407_v20 = vmul.f32 %v60_v17, %v60_v17  ;;  %v81_v21 = vcombine.high %v60_v17, %v60_v17  ;;  %497 = vmatpush1.bf16.xpose.msra.mxu0 %v496_v13  ;;  %499 = vmatprep.subr.bf16.mxu1 %v498_v14  ;;  %v77_v28 = vld [vmem:[#allocation5 + $0x78] sm:$0xff]  ;;  %v68_v33 = vld [vmem:[#allocation5 + $0x30] sm:$0xff]  ;;  %p564_p2 = scmp.ne.s32.totalorder %s481_s16, %s563_s17  ;;  %p569_p4 = scmp.lt.s32.totalorder %s563_s17, %s563_s17 }
  0x2c   :  { %501 = vmatpush1.bf16.xpose.msra.mxu1 %v500_v18  ;;  %v76_v34 = vld [vmem:[#allocation5 + $0x70] sm:$0xff]  ;;  %v61_v35 = vld [vmem:[#allocation2 + $0x8] sm:$0xff]  ;;  %503 = vmatprep.subr.bf16.mxu0 %v502_v25  ;;  %v506_v36 = vpack.c.bf16 %v77_v28, %v69_v27  ;;  %v504_v42 = vpack.c.bf16 %v74_v26, %v66_v24 }
  0x2d   :  { %v88_v19 = vrot.slane %v60_v17, %v87_v5  ;;  %v411_v30 = vcombine.high %v407_v20, %v407_v20  ;;  %v418_v31 = vrot.slane %v407_v20, %v87_v5  ;;  %v95_v32 = vrot.slane %v81_v21, %v87_v5  ;;  %p570_p5 = por %p569_p4, %p568_p3 }
  0x2e   :  { %v105_v37 = vrot.slane %v61_v35, %v87_v5  ;;  %507 = vmatprep.subr.bf16.mxu1 %v506_v36  ;;  %v508_v43 = vpack.c.bf16 %v76_v34, %v68_v33  ;;  %v98_v44 = vcombine.high %v61_v35, %v61_v35  ;;  %v408_v45 = vmul.f32 %v61_v35, %v61_v35 }
  0x2f   :  { %v96_v29 = vcombine.high %v88_v19, %v88_v19  ;;  %v425_v38 = vrot.slane %v411_v30, %v87_v5  ;;  %v426_v39 = vcombine.high %v418_v31, %v418_v31  ;;  %v454_v40 = vsel %vm453_vm0, %v418_v31, 0.0  ;;  %p571_p6 = pnand %p570_p5, %p564_p2 }
  0x30   :  { %v97_v41 = vcombine.high %v95_v32, %v95_v32  ;;  %v113_v47 = vcombine.high %v105_v37, %v105_v37  ;;  %v112_v51 = vrot.slane %v98_v44, %v87_v5  ;;  %v428_v52 = vcombine.high %v408_v45, %v408_v45 }
  0x31   :  { %187 = vmatprep.mubr.f32.mxu0 %v96_v29  ;;  %v455_v46 = vsel %vm453_vm0, %v426_v39, 0.0  ;;  %v427_v48 = vcombine.high %v425_v38, %v425_v38  ;;  %v457_v49 = vsel %vm453_vm0, %v425_v38, 0.0  ;;  %v435_v53 = vrot.slane %v408_v45, %v87_v5 }
  0x32   :  { %257 = vmatprep.mubr.f32.mxu1 %v97_v41  ;;  %v456_v50 = vadd.f32 %v455_v46, %v454_v40  ;;  %188 = vmatmul.mubr.f32.vlgmr.msra.gmra.mrb[0].mxu0 %v88_v19  ;;  %v114_v54 = vcombine.high %v112_v51, %v112_v51  ;;  %v442_v55 = vrot.slane %v428_v52, %v87_v5  ;;  %v596_v5 = vmov 0.0  }
  0x33   :  { %258 = vmatmul.mubr.f32.vlgmr.msra.gmra.mrb[0].mxu1 %v95_v32  ;;  %505 = vmatpush1.bf16.xpose.msra.mxu0 %v504_v42  ;;  %v443_v56 = vcombine.high %v435_v53, %v435_v53  ;;  %v459_v57 = vsel %vm453_vm0, %v427_v48, 0.0  ;;  %v461_v59 = vsel %vm453_vm0, %v435_v53, 0.0  ;;  %57 = vst.msk [vmem:[#allocation7] sm:$0x3] %vm56_vm1, %v596_v5 }
  0x34   :  { %509 = vmatpush1.bf16.xpose.msra.mxu1 %v508_v43  ;;  %327 = vmatprep.mubr.f32.mxu0 %v113_v47  ;;  %v458_v58 = vadd.f32 %v457_v49, %v456_v50  ;;  %v444_v61 = vcombine.high %v442_v55, %v442_v55  ;;  %v465_v0 = vsel %vm453_vm0, %v442_v55, 0.0  ;;  %59 = vst.msk [vmem:[%s683_s3] sm:$0x3] %vm58_vm2, %v596_v5 }
  0x35   :  { %397 = vmatprep.mubr.f32.mxu1 %v114_v54  ;;  %v463_v62 = vsel %vm453_vm0, %v443_v56, 0.0 }
  0x36   :  { %v460_v60 = vadd.f32 %v459_v57, %v458_v58  ;;  %v467_v2 = vsel %vm453_vm0, %v444_v61, 0.0 }
  0x38   :  { %v462_v63 = vadd.f32 %v461_v59, %v460_v60 }
  0x3a   :  { %328 = vmatmul.mubr.f32.vlgmr.msra.gmra.mrb[2].mxu0 %v105_v37  ;;  %v464_v1 = vadd.f32 %v463_v62, %v462_v63  ;;  %v78_v18 = vld [vmem:[#allocation7] sm:$0x3] }
  0x3b   :  { %398 = vmatmul.mubr.f32.vlgmr.msra.gmra.mrb[2].mxu1 %v112_v51  ;;  %v406_v6 = vld [vmem:[%s683_s3] sm:$0x3] }
  0x3c   :  { %v466_v3 = vadd.f32 %v465_v0, %v464_v1 }
  0x3e   :  { %v468_v4 = vadd.f32 %v467_v2, %v466_v3 }
  0x40   :  { %469 = vadd.xlane.f32.xlu0 %v468_v4 }
  0xcd   :  { %v470_v7 = vpop.xlane.xlu0 %469 }
  0xce   :  { %v471_v8 = vadd.f32 %v470_v7, %v406_v6 }
  0xd0   :  { %473 = vst.msk [vmem:[%s683_s3] sm:$0x3] %vm58_vm2, %v471_v8 }
 0x105   :  { %v189_v9 = vpop.f32.mrb[0].mxu0 }
 0x106   :  { %v191_v10 = vpop.f32.mrb[1].mxu0  ;;  %v259_v11 = vpop.f32.mrb[0].mxu1 }
 0x107   :  { %v260_v12 = vadd.f32 %v259_v11, %v189_v9  ;;  %v261_v13 = vpop.f32.mrb[1].mxu1 }
 0x10d   :  { %v329_v14 = vpop.f32.mrb[2].mxu0 }
 0x10e   :  { %v330_v15 = vadd.f32 %v329_v14, %v260_v12  ;;  %v331_v16 = vpop.f32.mrb[3].mxu0  ;;  %v399_v17 = vpop.f32.mrb[2].mxu1 }
 0x10f   :  { %v401_v19 = vpop.f32.mrb[3].mxu1 }
 0x110   :  { %v400_v20 = vadd.f32 %v399_v17, %v330_v15 }
 0x112   :  { %v403_v21 = vadd.f32 %v400_v20, %v78_v18 }
 0x114   :  { %405 = vst.msk [vmem:[#allocation7] sm:$0x3] %vm56_vm1, %v403_v21 }
 0x115   :  { %574 = shalt.err (!%p571_p6)
}
 0x116   :  { %s575_s19 = scalar_lea.hbm %s682_s2, 32 }
 0x117   :  { %p576_p7 = scmp.ne.s32.totalorder %s682_s2, %s575_s19  ;;  %p579_p8 = scmp.lt.u32.totalorder %s575_s19, %s682_s2 }
 0x119   :  { %p581_p9 = pnand %p579_p8, %p576_p7 }
 0x11b   :  { %584 = shalt.err (!%p581_p9)
}
 0x11c   :  { %483 = dma.vmem_to_hbm [thread:$0]  %s481_s16, 32, %s682_s2, [#allocation4]  }
 0x11d   :  { %589 = dma.done.wait [#allocation4], 32  }
 0x11e   :  { %590 = vsyncadd [#allocation4], 4294967264 }
 0x11f   :  { %491 = vsyncpa [#allocation3], 1 }
 0x120   :  { %492 = vsyncpa [#allocation6], 1 }
 0x121   :  { %493 = vsyncpa [#allocation4], 1 }

</bundles_post_ra>
